<compile_context>
chip_gen: v5e
topology: v5e:2x2
jax: 0.10.0
libtpu: 0.0.40
codegen_flags: <defaults>
</compile_context>

<pallas_src>
import functools

import jax
import jax.numpy as jnp
from jax.experimental import pallas as pl
from jax.experimental.pallas import tpu as pltpu


def _round_up(x, m):
    return ((x + m - 1) // m) * m


def _jacobi_kan_kernel(x_ref, c_ref, o_ref, p_ref, *, degree, alpha, beta,
                       i_pad, mxu_dtype):
    """One (batch-tile i, output-tile j) grid step.

    x_ref: (bt, I_pad)           raw input tile, f32 (zero-padded columns)
    c_ref: ((D+1)*I_pad, tn)     coefficients, degree-major rows, mxu_dtype
    o_ref: (bt, tn)              output tile (tn multiple of 128 -> unmasked vst)
    p_ref: (bt, (D+1)*I_pad)     VMEM scratch: Jacobi basis slab, mxu_dtype.
                                 Built once per batch tile (at j == 0) and reused
                                 for every output tile j ("arbitrary" inner axis).
    """

    @pl.when(pl.program_id(1) == 0)
    def _build_basis():
        # NOTE: padded batch rows see x == 0 -> tanh(0) = 0; they produce valid
        # (nonzero) Jacobi values that are sliced off in the wrapper.  Do not alias
        # / reuse the padded output buffer.
        x = jnp.tanh(x_ref[...].astype(jnp.float32))           # EUP/VPU in f32

        p_prev2 = jnp.ones_like(x)                              # P_0 = 1
        p_ref[:, 0:i_pad] = p_prev2.astype(mxu_dtype)
        p_prev = None
        if degree > 0:                                          # P_1
            p_prev = 0.5 * (alpha - beta) + (0.5 * (alpha + beta + 2.0)) * x
            p_ref[:, i_pad:2 * i_pad] = p_prev.astype(mxu_dtype)
        for n in range(2, degree + 1):                          # three-term recurrence
            a_n = 2.0 * n * (n + alpha + beta) * (2.0 * n + alpha + beta - 2.0)
            c1 = ((2.0 * n + alpha + beta - 1.0) * (2.0 * n + alpha + beta)
                  * (2.0 * n + alpha + beta - 2.0)) / a_n
            c2 = ((2.0 * n + alpha + beta - 1.0) * (alpha * alpha - beta * beta)) / a_n
            c3 = ((n + alpha + beta - 1.0) * (n + alpha - 1.0) * (n + beta - 1.0)
                  * (2.0 * n + alpha + beta)) / a_n
            p_next = c1 * x * p_prev - c3 * p_prev2
            # Trace-time prune: alpha == beta -> the term2 coefficient is exactly 0.
            # (Intentionally changes op count/rounding vs alpha != beta configs.)
            if c2 != 0.0:
                p_next = p_next - c2 * p_prev
            p_ref[:, n * i_pad:(n + 1) * i_pad] = p_next.astype(mxu_dtype)
            p_prev2, p_prev = p_prev, p_next

    # Single fused MXU contraction over the cached basis slab, f32 accumulate.
    o_ref[...] = jnp.dot(p_ref[...], c_ref[...],
                         preferred_element_type=jnp.float32).astype(o_ref.dtype)


def pack_jacobi_coeffs(coeffs_iod, *, i_pad, o_pad, dtype):
    """(I, O, D+1) -> ((D+1)*I_pad, O_pad) with row index d*I_pad + i.

    This is a full transpose/pad/cast of the parameter: precompute it ONCE per
    layer (or keep the parameter in this layout) and pass it to jacobi_kan_forward
    via `packed_coeffs=` to keep it off the per-call path.
    """
    input_dim, output_dim, dplus1 = coeffs_iod.shape
    c = jnp.transpose(coeffs_iod, (2, 0, 1))                   # (D+1, I, O)
    c = jnp.pad(c, ((0, 0), (0, i_pad - input_dim), (0, o_pad - output_dim)))
    return c.reshape((dplus1 * i_pad, o_pad)).astype(dtype)


def jacobi_kan_forward(x, coeffs_iod, *, degree, alpha=1.0, beta=1.0,
                       batch_tile=None, mxu_dtype=jnp.bfloat16,
                       out_dtype=jnp.float32, packed_coeffs=None):
    """Pallas JacobiKANLayer forward.

    x:          any shape with trailing feature dim == input_dim (reshaped to (-1, I))
    coeffs_iod: (input_dim, output_dim, degree+1) -- same layout as the PyTorch param
    mxu_dtype:  dtype of the basis slab + coefficients at the MXU boundary.  Use
                jnp.float32 for an accuracy-sensitive (all-f32) path.
    returns:    (B, output_dim) in out_dtype
    """
    input_dim, output_dim, dplus1 = coeffs_iod.shape
    assert dplus1 == degree + 1

    i_pad = _round_up(input_dim, 128)     # lane-dense recurrence, aligned slab slices
    o_pad = _round_up(output_dim, 256)    # lane-dense stores, full MXU N width
    k_dim = dplus1 * i_pad

    x2 = jnp.reshape(x, (-1, input_dim)).astype(jnp.float32)
    batch = x2.shape[0]
    assert batch > 0
    if i_pad != input_dim:
        x2 = jnp.pad(x2, ((0, 0), (0, i_pad - input_dim)))

    if packed_coeffs is None:
        packed_coeffs = pack_jacobi_coeffs(coeffs_iod, i_pad=i_pad, o_pad=o_pad,
                                           dtype=mxu_dtype)
    assert packed_coeffs.shape == (k_dim, o_pad)

    itemsize = jnp.dtype(mxu_dtype).itemsize
    out_itemsize = jnp.dtype(out_dtype).itemsize

    # Output column tile: if the whole coefficient matrix is small, keep it fully
    # resident (single j step -> its block index never changes -> DMA'd exactly once
    # for the whole call).  Otherwise stream 512/256-wide lane-dense column tiles.
    coeff_bytes = k_dim * o_pad * itemsize
    if coeff_bytes <= (4 << 20) and o_pad <= 1024:
        tn = o_pad
    elif o_pad % 512 == 0:
        tn = 512
    else:
        tn = 256

    # Batch tile: 16-row aligned (bf16 sublane packing), big enough to amortize
    # per-step overhead, but chosen so batches > ~32 rows still give >= 2 batch
    # tiles on the "parallel" axis (keeps both v7x TensorCores busy).
    row_align = 8 if itemsize >= 4 else 16
    if batch_tile is None:
        bt = min(512, _round_up(max(pl.cdiv(batch, 2), row_align), row_align))
    else:
        bt = int(batch_tile)
        assert bt > 0 and bt % row_align == 0

    # Generation-aware VMEM cap: v5e/v6e have 128 MiB physical, v7x has 64 MiB.
    try:
        info = pltpu.get_tpu_info()
        phys = getattr(info, "vmem_capacity_bytes", None) or (64 << 20)
    except Exception:  # conservative fallback, safe on all generations
        phys = 64 << 20
    vmem_cap = int(0.85 * phys)

    def vmem_est(bt_):
        return (2 * bt_ * i_pad * 4             # double-buffered x tiles (f32)
                + 2 * k_dim * tn * itemsize     # double-buffered coefficient tiles
                + 2 * bt_ * tn * out_itemsize   # double-buffered output tiles
                + bt_ * k_dim * itemsize        # basis slab scratch
                + 3 * bt_ * i_pad * 4)          # live f32 recurrence temporaries

    # Shrink the batch tile until the (~1.5x-margin) footprint fits the cap.
    while bt > row_align and int(1.5 * vmem_est(bt)) > vmem_cap:
        bt = max(row_align, _round_up(bt // 2, row_align))
    # TODO(synk): if even the minimal bt does not fit (very large (D+1)*I_pad on
    # v7x's 64 MiB VMEM), add a K-reduction grid axis over input chunks with an
    # f32 accumulator scratch instead of loading full coefficient column blocks.

    b_pad = _round_up(batch, bt)
    if b_pad != batch:
        x2 = jnp.pad(x2, ((0, b_pad - batch), (0, 0)))

    vmem_limit = int(min(vmem_cap, max(32 << 20, int(1.5 * vmem_est(bt)))))

    kernel = functools.partial(_jacobi_kan_kernel, degree=degree,
                               alpha=float(alpha), beta=float(beta),
                               i_pad=i_pad, mxu_dtype=mxu_dtype)

    out = pl.pallas_call(
        kernel,
        out_shape=jax.ShapeDtypeStruct((b_pad, o_pad), out_dtype),
        grid_spec=pltpu.PrefetchScalarGridSpec(
            num_scalar_prefetch=0,
            grid=(b_pad // bt, o_pad // tn),
            in_specs=[
                pl.BlockSpec((bt, i_pad), lambda i, j: (i, 0)),
                pl.BlockSpec((k_dim, tn), lambda i, j: (0, j)),
            ],
            out_specs=pl.BlockSpec((bt, tn), lambda i, j: (i, j)),
            scratch_shapes=[pltpu.VMEM((bt, k_dim), mxu_dtype)],
        ),
        compiler_params=pltpu.CompilerParams(
            # batch: parallel (megacore); j: arbitrary (basis scratch carried over j)
            dimension_semantics=("parallel", "arbitrary"),
            vmem_limit_bytes=vmem_limit),
    )(x2, packed_coeffs)

    return out[:batch, :output_dim]


def jacobi_kan_reference(x, coeffs_iod, *, degree, alpha=1.0, beta=1.0):
    """Pure-JAX reference mirroring the PyTorch forward (full f32)."""
    input_dim, output_dim, dplus1 = coeffs_iod.shape
    x = jnp.reshape(x, (-1, input_dim)).astype(jnp.float32)
    x = jnp.tanh(x)
    polys = [jnp.ones_like(x)]
    if degree > 0:
        polys.append(0.5 * (alpha - beta) + (alpha + beta + 2.0) * x / 2.0)
    for n in range(2, degree + 1):
        a_n = 2.0 * n * (n + alpha + beta) * (2.0 * n + alpha + beta - 2.0)
        t1 = ((2.0 * n + alpha + beta - 1.0) * (2.0 * n + alpha + beta)
              * (2.0 * n + alpha + beta - 2.0)) * x * polys[n - 1]
        t2 = ((2.0 * n + alpha + beta - 1.0) * (alpha ** 2 - beta ** 2)) * polys[n - 1]
        t3 = ((n + alpha + beta - 1.0) * (n + alpha - 1.0) * (n + beta - 1.0)
              * (2.0 * n + alpha + beta)) * polys[n - 2]
        polys.append((t1 - t2 - t3) / a_n)
    jac = jnp.stack(polys, axis=-1)                    # (B, I, D+1)
    return jnp.einsum('bid,iod->bo', jac, coeffs_iod,
                      precision=jax.lax.Precision.HIGHEST)


if __name__ == "__main__":
    # Small deterministic problem: batch = 2*8 = 16, input_dim=32, output_dim=16,
    # degree=4, alpha=beta=1 (matches the PyTorch module defaults).
    input_dim, output_dim, degree = 32, 16, 4
    alpha, beta = 1.0, 1.0

    key = jax.random.PRNGKey(0)
    kx, kc = jax.random.split(key)

    x = jax.random.normal(kx, (2, 8, input_dim), dtype=jnp.float32)

    # xavier_normal_-style init for the 3-D (I, O, D+1) parameter, using PyTorch's
    # fan convention: fan_in = O*(D+1), fan_out = I*(D+1).
    fan_in = output_dim * (degree + 1)
    fan_out = input_dim * (degree + 1)
    std = (2.0 / (fan_in + fan_out)) ** 0.5
    coeffs_iod = std * jax.random.normal(
        kc, (input_dim, output_dim, degree + 1), dtype=jnp.float32)

    y = jacobi_kan_forward(x, coeffs_iod, degree=degree, alpha=alpha, beta=beta)
    y = jax.block_until_ready(y)

    y_ref = jacobi_kan_reference(x, coeffs_iod, degree=degree, alpha=alpha, beta=beta)

    assert y.shape == (16, output_dim)
    # bf16 MXU operands with f32 accumulation -> loose tolerance vs full-f32
    # reference.  Pass mxu_dtype=jnp.float32 for an all-f32 accuracy path.
    assert jnp.allclose(y, y_ref, atol=5e-2, rtol=5e-2), "mismatch vs reference"

    print("KERNEL_OK")
</pallas_src>

<mosaic_0001>
module attributes {stable_mosaic.version = 11 : i64} {
  func.func @_jacobi_kan_kernel(%arg0: i32, %arg1: i32, %arg2: memref<16x128xf32, #tpu.memory_space<vmem>>, %arg3: memref<640x256xbf16, #tpu.memory_space<vmem>>, %arg4: memref<16x256xf32, #tpu.memory_space<vmem>>, %arg5: memref<16x640xbf16, #tpu.memory_space<vmem>>) attributes {dimension_semantics = [#tpu.dimension_semantics<parallel>, #tpu.dimension_semantics<arbitrary>], iteration_bounds = array<i64: 1, 1>, scalar_prefetch = 0 : i64, scratch_operands = 1 : i64, tpu.core_type = #tpu.core_type<tc>, window_params = [{transform_indices = @transform_0, window_bounds = array<i64: 16, 128>}, {transform_indices = @transform_1, window_bounds = array<i64: 640, 256>}, {transform_indices = @transform_2, window_bounds = array<i64: 16, 256>}]} {
    %c0_i32 = arith.constant 0 : i32
    %0 = arith.cmpi eq, %arg1, %c0_i32 : i32
    %1 = arith.extui %0 : i1 to i32
    %c0_i32_0 = arith.constant 0 : i32
    %2 = arith.cmpi ne, %1, %c0_i32_0 : i32
    scf.if %2 {
      %c0_6 = arith.constant 0 : index
      %c0_7 = arith.constant 0 : index
      %7 = vector.load %arg2[%c0_6, %c0_7] : memref<16x128xf32, #tpu.memory_space<vmem>>, vector<16x128xf32>
      %8 = math.tanh %7 : vector<16x128xf32>
      %cst_8 = arith.constant 1.000000e+00 : f32
      %9 = vector.broadcast %cst_8 : f32 to vector<16x128xf32>
      %10 = arith.truncf %9 : vector<16x128xf32> to vector<16x128xbf16>
      %c0_9 = arith.constant 0 : index
      %c0_10 = arith.constant 0 : index
      %11 = vector.load %arg5[%c0_9, %c0_10] : memref<16x640xbf16, #tpu.memory_space<vmem>>, vector<16x128xbf16>
      tpu.vector_store %arg5[%c0_9, %c0_10], %10 {strides = array<i32>} : memref<16x640xbf16, #tpu.memory_space<vmem>>, vector<16x128xbf16>,
      %cst_11 = arith.constant 2.000000e+00 : f32
      %12 = vector.broadcast %cst_11 : f32 to vector<16x128xf32>
      %13 = arith.mulf %12, %8 : vector<16x128xf32>
      %cst_12 = arith.constant 0.000000e+00 : f32
      %14 = vector.broadcast %cst_12 : f32 to vector<16x128xf32>
      %15 = arith.addf %14, %13 : vector<16x128xf32>
      %16 = arith.truncf %15 : vector<16x128xf32> to vector<16x128xbf16>
      %c0_13 = arith.constant 0 : index
      %c128 = arith.constant 128 : index
      %17 = vector.load %arg5[%c0_13, %c128] : memref<16x640xbf16, #tpu.memory_space<vmem>>, vector<16x128xbf16>
      tpu.vector_store %arg5[%c0_13, %c128], %16 {strides = array<i32>} : memref<16x640xbf16, #tpu.memory_space<vmem>>, vector<16x128xbf16>,
      %cst_14 = arith.constant 1.875000e+00 : f32
      %18 = vector.broadcast %cst_14 : f32 to vector<16x128xf32>
      %19 = arith.mulf %18, %8 : vector<16x128xf32>
      %20 = arith.mulf %19, %15 : vector<16x128xf32>
      %cst_15 = arith.constant 1.125000e+00 : f32
      %21 = vector.broadcast %cst_15 : f32 to vector<16x128xf32>
      %22 = arith.mulf %21, %9 : vector<16x128xf32>
      %23 = arith.subf %20, %22 : vector<16x128xf32>
      %24 = arith.truncf %23 : vector<16x128xf32> to vector<16x128xbf16>
      %c0_16 = arith.constant 0 : index
      %c256 = arith.constant 256 : index
      %25 = vector.load %arg5[%c0_16, %c256] : memref<16x640xbf16, #tpu.memory_space<vmem>>, vector<16x128xbf16>
      tpu.vector_store %arg5[%c0_16, %c256], %24 {strides = array<i32>} : memref<16x640xbf16, #tpu.memory_space<vmem>>, vector<16x128xbf16>,
      %cst_17 = arith.constant 1.86666667 : f32
      %26 = vector.broadcast %cst_17 : f32 to vector<16x128xf32>
      %27 = arith.mulf %26, %8 : vector<16x128xf32>
      %28 = arith.mulf %27, %23 : vector<16x128xf32>
      %cst_18 = arith.constant 1.600000e+00 : f32
      %29 = vector.broadcast %cst_18 : f32 to vector<16x128xf32>
      %30 = arith.mulf %29, %15 : vector<16x128xf32>
      %31 = arith.subf %28, %30 : vector<16x128xf32>
      %32 = arith.truncf %31 : vector<16x128xf32> to vector<16x128xbf16>
      %c0_19 = arith.constant 0 : index
      %c384 = arith.constant 384 : index
      %33 = vector.load %arg5[%c0_19, %c384] : memref<16x640xbf16, #tpu.memory_space<vmem>>, vector<16x128xbf16>
      tpu.vector_store %arg5[%c0_19, %c384], %32 {strides = array<i32>} : memref<16x640xbf16, #tpu.memory_space<vmem>>, vector<16x128xbf16>,
      %cst_20 = arith.constant 1.875000e+00 : f32
      %34 = vector.broadcast %cst_20 : f32 to vector<16x128xf32>
      %35 = arith.mulf %34, %8 : vector<16x128xf32>
      %36 = arith.mulf %35, %31 : vector<16x128xf32>
      %cst_21 = arith.constant 2.08333325 : f32
      %37 = vector.broadcast %cst_21 : f32 to vector<16x128xf32>
      %38 = arith.mulf %37, %23 : vector<16x128xf32>
      %39 = arith.subf %36, %38 : vector<16x128xf32>
      %40 = arith.truncf %39 : vector<16x128xf32> to vector<16x128xbf16>
      %c0_22 = arith.constant 0 : index
      %c512 = arith.constant 512 : index
      %41 = vector.load %arg5[%c0_22, %c512] : memref<16x640xbf16, #tpu.memory_space<vmem>>, vector<16x128xbf16>
      tpu.vector_store %arg5[%c0_22, %c512], %40 {strides = array<i32>} : memref<16x640xbf16, #tpu.memory_space<vmem>>, vector<16x128xbf16>,
    } else {
    }
    %c0 = arith.constant 0 : index
    %c0_1 = arith.constant 0 : index
    %3 = vector.load %arg5[%c0, %c0_1] : memref<16x640xbf16, #tpu.memory_space<vmem>>, vector<16x640xbf16>
    %c0_2 = arith.constant 0 : index
    %c0_3 = arith.constant 0 : index
    %4 = vector.load %arg3[%c0_2, %c0_3] : memref<640x256xbf16, #tpu.memory_space<vmem>>, vector<640x256xbf16>
    %cst = arith.constant dense<0.000000e+00> : vector<16x256xf32>
    %5 = tpu.matmul %3, %4, %cst {dimension_numbers = #tpu.dot_dimension_numbers<[1], [0], [0], [1], [0, 0, 1, 1], [], []>} : vector<16x640xbf16>, vector<640x256xbf16>, vector<16x256xf32> -> vector<16x256xf32>
    %c0_4 = arith.constant 0 : index
    %c0_5 = arith.constant 0 : index
    %6 = vector.load %arg4[%c0_4, %c0_5] : memref<16x256xf32, #tpu.memory_space<vmem>>, vector<16x256xf32>
    tpu.vector_store %arg4[%c0_4, %c0_5], %5 {strides = array<i32>} : memref<16x256xf32, #tpu.memory_space<vmem>>, vector<16x256xf32>,
    return
  }
  func.func @transform_0(%arg0: i32, %arg1: i32) -> (i32, i32) {
    %c0_i32 = arith.constant 0 : i32
    %c0_i32_0 = arith.constant 0 : i32
    return %arg0, %c0_i32 : i32, i32
  }
  func.func @transform_1(%arg0: i32, %arg1: i32) -> (i32, i32) {
    %c0_i32 = arith.constant 0 : i32
    %c0_i32_0 = arith.constant 0 : i32
    return %c0_i32, %arg1 : i32, i32
  }
  func.func @transform_2(%arg0: i32, %arg1: i32) -> (i32, i32) {
    %c0_i32 = arith.constant 0 : i32
    return %arg0, %arg1 : i32, i32
  }
}

</mosaic_0001>

<bundles_post_ra>
// kernel: tpu_custom_call.1
= control target key start
LH: loop header
LB: loop body
LE: loop exit
PB: predicated region body
PF: predicated region fallthrough
CT: control target
= control target key end

     0   :  { %7 = vsyncpa [#allocation4], 0  ;;  %s1344_s0 = inlined_call_operand.hbm [shape: f32[16,128], index: 0, kind: input, shape index: {}]   ;;  %s1345_s1 = inlined_call_operand.hbm [shape: bf16[640,256], index: 1, kind: input, shape index: {}]   ;;  %s1346_s2 = inlined_call_operand.hbm [shape: f32[16,256], index: 2, kind: output, shape index: {}]  }
   0x1   :  { %8 = vsyncpa [#allocation7], 0 }
   0x2   :  { %9 = vsyncpa [#allocation5], 0  ;;  %s14_s11 = sshll.u32 %s1344_s0, 4  ;;  %s1288_s12 = smov [#allocation3]   ;;  %s15_s11 = int_to_ptr.hbm [resolvable:$true] %s14_s11 }
   0x3   :  { %s16_s13 = sshll.u32 %s1288_s12, 4  ;;  %s27_s16 = sshll.u32 %s1345_s1, 4  ;;  %s17_s13 = int_to_ptr.vmem [resolvable:$true] %s16_s13  ;;  %s28_s16 = int_to_ptr.hbm [resolvable:$true] %s27_s16 }
   0x4   :  { %s1289_s17 = smov 128   ;;  %s1290_s18 = smov 8  }
   0x5   :  { %22 = dma.hbm_to_vmem [thread:$0]  %s15_s11, 256, %s17_s13, [#allocation4], %s1289_s17, %s1289_s17, %s1290_s18  }
   0x6   :  { %s1291_s19 = smov [#allocation6]  }
   0x7   :  { %s29_s20 = sshll.u32 %s1291_s19, 4  ;;  %s30_s20 = int_to_ptr.vmem [resolvable:$true] %s29_s20 }
   0x8   :  { %35 = dma.hbm_to_vmem [thread:$0]  %s28_s16, 10240, %s30_s20, [#allocation7], %s1289_s17, %s1289_s17, %s1290_s18  }
   0x9   :  { %1282 = dma.done.wait [#allocation4], 256  }
   0xa   :  { %1283 = vsyncadd [#allocation4], 4294967040 }
   0xb   :  { %1284 = dma.done.wait [#allocation7], 10240  }
   0xc   :  { %1285 = vsyncadd [#allocation7], 4294957056  ;;  %v851_v0 = vld [vmem:[#allocation6 + $0x70] sm:$0xf]  ;;  %v1133_v1 = vld [vmem:[#allocation6 + $0x74] sm:$0xf0] }
   0xd   :  { %v915_v2 = vld [vmem:[#allocation6 + $0xf0] sm:$0xf]  ;;  %v852_v3 = vor.u32 %v1133_v1, %v851_v0  ;;  %v1149_v4 = vld [vmem:[#allocation6 + $0xf4] sm:$0xf0]  ;;  %v843_v11 = vld [vmem:[#allocation6 + $0x60] sm:$0xf] }
   0xe   :  { %v979_v5 = vld [vmem:[#allocation6 + $0x170] sm:$0xf]  ;;  %v1165_v6 = vld [vmem:[#allocation6 + $0x174] sm:$0xf0]  ;;  %v916_v7 = vor.u32 %v1149_v4, %v915_v2  ;;  %v1131_v13 = vld [vmem:[#allocation6 + $0x64] sm:$0xf0] }
   0xf   :  { %v980_v8 = vor.u32 %v1165_v6, %v979_v5  ;;  %v1043_v9 = vld [vmem:[#allocation6 + $0x1f0] sm:$0xf]  ;;  %v1181_v10 = vld [vmem:[#allocation6 + $0x1f4] sm:$0xf0]  ;;  %607 = vmatpush.bf16.msra.mxu0 %v852_v3  ;;  %v907_v14 = vld [vmem:[#allocation6 + $0xe0] sm:$0xf]  ;;  %v844_v16 = vor.u32 %v1131_v13, %v843_v11 }
  0x10   :  { %v1044_v12 = vor.u32 %v1181_v10, %v1043_v9  ;;  %v1147_v15 = vld [vmem:[#allocation6 + $0xe4] sm:$0xf0]  ;;  %621 = vmatpush.bf16.msra.mxu1 %v916_v7  ;;  %v971_v18 = vld [vmem:[#allocation6 + $0x160] sm:$0xf]  ;;  %v835_v23 = vld [vmem:[#allocation6 + $0x50] sm:$0xf] }
  0x11   :  { %635 = vmatpush.bf16.msra.mxu2 %v980_v8  ;;  %v908_v17 = vor.u32 %v1147_v15, %v907_v14  ;;  %v1163_v19 = vld [vmem:[#allocation6 + $0x164] sm:$0xf0]  ;;  %v1035_v20 = vld [vmem:[#allocation6 + $0x1e0] sm:$0xf]  ;;  %v1129_v24 = vld [vmem:[#allocation6 + $0x54] sm:$0xf0] }
  0x12   :  { %649 = vmatpush.bf16.msra.mxu3 %v1044_v12  ;;  %v972_v21 = vor.u32 %v1163_v19, %v971_v18  ;;  %v1179_v22 = vld [vmem:[#allocation6 + $0x1e4] sm:$0xf0]  ;;  %v899_v26 = vld [vmem:[#allocation6 + $0xd0] sm:$0xf]  ;;  %v1145_v27 = vld [vmem:[#allocation6 + $0xd4] sm:$0xf0]  ;;  %v836_v29 = vor.u32 %v1129_v24, %v835_v23 }
  0x13   :  { %v1036_v25 = vor.u32 %v1179_v22, %v1035_v20  ;;  %v963_v28 = vld [vmem:[#allocation6 + $0x150] sm:$0xf]  ;;  %608 = vmatpush.bf16.msra.mxu0 %v844_v16  ;;  %v1161_v30 = vld [vmem:[#allocation6 + $0x154] sm:$0xf0]  ;;  %v900_v33 = vor.u32 %v1145_v27, %v899_v26  ;;  %v827_v35 = vld [vmem:[#allocation6 + $0x40] sm:$0xf] }
  0x14   :  { %v1027_v31 = vld [vmem:[#allocation6 + $0x1d0] sm:$0xf]  ;;  %v1177_v32 = vld [vmem:[#allocation6 + $0x1d4] sm:$0xf0]  ;;  %622 = vmatpush.bf16.msra.mxu1 %v908_v17  ;;  %v964_v34 = vor.u32 %v1161_v30, %v963_v28  ;;  %v1127_v36 = vld [vmem:[#allocation6 + $0x44] sm:$0xf0] }
  0x15   :  { %636 = vmatpush.bf16.msra.mxu2 %v972_v21  ;;  %v891_v37 = vld [vmem:[#allocation6 + $0xc0] sm:$0xf]  ;;  %v1028_v38 = vor.u32 %v1177_v32, %v1027_v31  ;;  %v1143_v39 = vld [vmem:[#allocation6 + $0xc4] sm:$0xf0]  ;;  %v828_v44 = vor.u32 %v1127_v36, %v827_v35  ;;  %v819_v47 = vld [vmem:[#allocation6 + $0x30] sm:$0xf] }
  0x16   :  { %650 = vmatpush.bf16.msra.mxu3 %v1036_v25  ;;  %v955_v40 = vld [vmem:[#allocation6 + $0x140] sm:$0xf]  ;;  %v1159_v41 = vld [vmem:[#allocation6 + $0x144] sm:$0xf0]  ;;  %v892_v45 = vor.u32 %v1143_v39, %v891_v37  ;;  %v1125_v48 = vld [vmem:[#allocation6 + $0x34] sm:$0xf0] }
  0x17   :  { %v1019_v42 = vld [vmem:[#allocation6 + $0x1c0] sm:$0xf]  ;;  %v1175_v43 = vld [vmem:[#allocation6 + $0x1c4] sm:$0xf0]  ;;  %609 = vmatpush.bf16.msra.mxu0 %v836_v29  ;;  %v956_v46 = vor.u32 %v1159_v41, %v955_v40  ;;  %v883_v49 = vld [vmem:[#allocation6 + $0xb0] sm:$0xf]  ;;  %v820_v56 = vor.u32 %v1125_v48, %v819_v47 }
  0x18   :  { %623 = vmatpush.bf16.msra.mxu1 %v900_v33  ;;  %v1020_v50 = vor.u32 %v1175_v43, %v1019_v42  ;;  %v1141_v51 = vld [vmem:[#allocation6 + $0xb4] sm:$0xf0]  ;;  %v947_v52 = vld [vmem:[#allocation6 + $0x130] sm:$0xf]  ;;  %v811_v59 = vld [vmem:[#allocation6 + $0x20] sm:$0xf] }
  0x19   :  { %637 = vmatpush.bf16.msra.mxu2 %v964_v34  ;;  %v1157_v53 = vld [vmem:[#allocation6 + $0x134] sm:$0xf0]  ;;  %v1011_v54 = vld [vmem:[#allocation6 + $0x1b0] sm:$0xf]  ;;  %v884_v57 = vor.u32 %v1141_v51, %v883_v49  ;;  %v1123_v60 = vld [vmem:[#allocation6 + $0x24] sm:$0xf0] }
  0x1a   :  { %651 = vmatpush.bf16.msra.mxu3 %v1028_v38  ;;  %v1173_v55 = vld [vmem:[#allocation6 + $0x1b4] sm:$0xf0]  ;;  %v948_v58 = vor.u32 %v1157_v53, %v947_v52  ;;  %v875_v61 = vld [vmem:[#allocation6 + $0xa0] sm:$0xf]  ;;  %v1139_v63 = vld [vmem:[#allocation6 + $0xa4] sm:$0xf0]  ;;  %v812_v4 = vor.u32 %v1123_v60, %v811_v59 }
  0x1b   :  { %610 = vmatpush.bf16.msra.mxu0 %v828_v44  ;;  %v1012_v62 = vor.u32 %v1173_v55, %v1011_v54  ;;  %v939_v0 = vld [vmem:[#allocation6 + $0x120] sm:$0xf]  ;;  %v1155_v1 = vld [vmem:[#allocation6 + $0x124] sm:$0xf0]  ;;  %v876_v5 = vor.u32 %v1139_v63, %v875_v61  ;;  %v803_v7 = vld [vmem:[#allocation6 + $0x10] sm:$0xf] }
  0x1c   :  { %624 = vmatpush.bf16.msra.mxu1 %v892_v45  ;;  %v1003_v2 = vld [vmem:[#allocation6 + $0x1a0] sm:$0xf]  ;;  %v1171_v3 = vld [vmem:[#allocation6 + $0x1a4] sm:$0xf0]  ;;  %v940_v6 = vor.u32 %v1155_v1, %v939_v0  ;;  %v1121_v8 = vld [vmem:[#allocation6 + $0x14] sm:$0xf0] }
  0x1d   :  { %638 = vmatpush.bf16.msra.mxu2 %v956_v46  ;;  %v867_v9 = vld [vmem:[#allocation6 + $0x90] sm:$0xf]  ;;  %v1004_v10 = vor.u32 %v1171_v3, %v1003_v2  ;;  %v1137_v11 = vld [vmem:[#allocation6 + $0x94] sm:$0xf0]  ;;  %v804_v16 = vor.u32 %v1121_v8, %v803_v7  ;;  %v795_v17 = vld [vmem:[#allocation6] sm:$0xf] }
  0x1e   :  { %652 = vmatpush.bf16.msra.mxu3 %v1020_v50  ;;  %v931_v12 = vld [vmem:[#allocation6 + $0x110] sm:$0xf]  ;;  %v1153_v13 = vld [vmem:[#allocation6 + $0x114] sm:$0xf0]  ;;  %v1119_v18 = vld [vmem:[#allocation6 + $0x4] sm:$0xf0]  ;;  %v868_v19 = vor.u32 %v1137_v11, %v867_v9 }
  0x1f   :  { %611 = vmatpush.bf16.msra.mxu0 %v820_v56  ;;  %v995_v14 = vld [vmem:[#allocation6 + $0x190] sm:$0xf]  ;;  %v1169_v15 = vld [vmem:[#allocation6 + $0x194] sm:$0xf0]  ;;  %v932_v20 = vor.u32 %v1153_v13, %v931_v12  ;;  %v859_v21 = vld [vmem:[#allocation6 + $0x80] sm:$0xf]  ;;  %v796_v31 = vor.u32 %v1119_v18, %v795_v17 }
  0x20   :  { %625 = vmatpush.bf16.msra.mxu1 %v884_v57  ;;  %v1135_v22 = vld [vmem:[#allocation6 + $0x84] sm:$0xf0]  ;;  %v923_v23 = vld [vmem:[#allocation6 + $0x100] sm:$0xf]  ;;  %v996_v24 = vor.u32 %v1169_v15, %v995_v14  ;;  %v1107_v26 = vld [vmem:[#allocation6 + $0x270] sm:$0xf] }
  0x21   :  { %639 = vmatpush.bf16.msra.mxu2 %v948_v58  ;;  %v1151_v25 = vld [vmem:[#allocation6 + $0x104] sm:$0xf0]  ;;  %v1197_v27 = vld [vmem:[#allocation6 + $0x274] sm:$0xf0]  ;;  %v1132_v28 = vld [vmem:[#allocation6 + $0x74] sm:$0xf]  ;;  %v860_v35 = vor.u32 %v1135_v22, %v859_v21 }
  0x22   :  { %653 = vmatpush.bf16.msra.mxu3 %v1012_v62  ;;  %v853_v29 = vld [vmem:[#allocation6 + $0x78] sm:$0xf0]  ;;  %v1148_v30 = vld [vmem:[#allocation6 + $0xf4] sm:$0xf]  ;;  %v987_v33 = vld [vmem:[#allocation6 + $0x180] sm:$0xf]  ;;  %v924_v36 = vor.u32 %v1151_v25, %v923_v23  ;;  %v1108_v39 = vor.u32 %v1197_v27, %v1107_v26 }
  0x23   :  { %612 = vmatpush.bf16.msra.mxu0 %v812_v4  ;;  %v917_v32 = vld [vmem:[#allocation6 + $0xf8] sm:$0xf0]  ;;  %v1167_v34 = vld [vmem:[#allocation6 + $0x184] sm:$0xf0]  ;;  %v1164_v37 = vld [vmem:[#allocation6 + $0x174] sm:$0xf]  ;;  %v856_v40 = vor.u32 %v1132_v28, %v853_v29 }
  0x24   :  { %626 = vmatpush.bf16.msra.mxu1 %v876_v5  ;;  %v981_v38 = vld [vmem:[#allocation6 + $0x178] sm:$0xf0]  ;;  %v1099_v41 = vld [vmem:[#allocation6 + $0x260] sm:$0xf]  ;;  %v1195_v42 = vld [vmem:[#allocation6 + $0x264] sm:$0xf0]  ;;  %v920_v43 = vor.u32 %v1148_v30, %v917_v32  ;;  %v988_v44 = vor.u32 %v1167_v34, %v987_v33 }
  0x25   :  { %640 = vmatpush.bf16.msra.mxu2 %v940_v6  ;;  %v1130_v45 = vld [vmem:[#allocation6 + $0x64] sm:$0xf]  ;;  %v845_v46 = vld [vmem:[#allocation6 + $0x68] sm:$0xf0]  ;;  %v984_v48 = vor.u32 %v1164_v37, %v981_v38  ;;  %v1292_v52 = vmov 1065369472   ;;  %v1100_v55 = vor.u32 %v1195_v42, %v1099_v41 }
  0x26   :  { %654 = vmatpush.bf16.msra.mxu3 %v1004_v10  ;;  %v1146_v47 = vld [vmem:[#allocation6 + $0xe4] sm:$0xf]  ;;  %v909_v49 = vld [vmem:[#allocation6 + $0xe8] sm:$0xf0]  ;;  %53 = vst [vmem:[#allocation2] sm:$0xf] %v1292_v52  ;;  %v848_v56 = vor.u32 %v1130_v45, %v845_v46 }
  0x27   :  { %613 = vmatpush.bf16.msra.mxu0 %v804_v16  ;;  %v1162_v50 = vld [vmem:[#allocation6 + $0x164] sm:$0xf]  ;;  %v973_v51 = vld [vmem:[#allocation6 + $0x168] sm:$0xf0]  ;;  %v49_v53 = vld [vmem:[#allocation3] sm:$0xff]  ;;  %v912_v58 = vor.u32 %v1146_v47, %v909_v49  ;;  %s1293_s0 = smov [#allocation8]  }
  0x28   :  { %627 = vmatpush.bf16.msra.mxu1 %v868_v19  ;;  %v50_v54 = vld [vmem:[#allocation3 + $0x8] sm:$0xff]  ;;  %v1091_v57 = vld [vmem:[#allocation6 + $0x250] sm:$0xf]  ;;  %54 = vst [vmem:[#allocation2 + $0x14] sm:$0xf] %v1292_v52  ;;  %1206 = vtanh.f32 %v49_v53  ;;  %v976_v62 = vor.u32 %v1162_v50, %v973_v51  ;;  %s755_s1 = sshll.u32 %s1293_s0, 4  ;;  %s756_s1 = int_to_ptr.vmem [resolvable:$true] %s755_s1 }
  0x29   :  { %641 = vmatpush.bf16.msra.mxu2 %v932_v20  ;;  %v1193_v59 = vld [vmem:[#allocation6 + $0x254] sm:$0xf0]  ;;  %v1128_v60 = vld [vmem:[#allocation6 + $0x54] sm:$0xf]  ;;  %v837_v61 = vld [vmem:[#allocation6 + $0x58] sm:$0xf0]  ;;  %1208 = vtanh.f32 %v50_v54 }
  0x2a   :  { %655 = vmatpush.bf16.msra.mxu3 %v996_v24  ;;  %v1144_v63 = vld [vmem:[#allocation6 + $0xd4] sm:$0xf]  ;;  %v901_v0 = vld [vmem:[#allocation6 + $0xd8] sm:$0xf0]  ;;  %v1092_v3 = vor.u32 %v1193_v59, %v1091_v57  ;;  %v840_v4 = vor.u32 %v1128_v60, %v837_v61  ;;  %v1083_v5 = vld [vmem:[#allocation6 + $0x240] sm:$0xf] }
  0x2b   :  { %614 = vmatpush.bf16.msra.mxu0 %v796_v31  ;;  %v1160_v1 = vld [vmem:[#allocation6 + $0x154] sm:$0xf]  ;;  %v965_v2 = vld [vmem:[#allocation6 + $0x158] sm:$0xf0]  ;;  %v1191_v6 = vld [vmem:[#allocation6 + $0x244] sm:$0xf0]  ;;  %v904_v8 = vor.u32 %v1144_v63, %v901_v0 }
  0x2c   :  { %628 = vmatpush.bf16.msra.mxu1 %v860_v35  ;;  %v1126_v7 = vld [vmem:[#allocation6 + $0x44] sm:$0xf]  ;;  %v829_v9 = vld [vmem:[#allocation6 + $0x48] sm:$0xf0]  ;;  %v968_v13 = vor.u32 %v1160_v1, %v965_v2  ;;  %v1084_v18 = vor.u32 %v1191_v6, %v1083_v5  ;;  %v1075_v22 = vld [vmem:[#allocation6 + $0x230] sm:$0xf] }
  0x2d   :  { %642 = vmatpush.bf16.msra.mxu2 %v924_v36  ;;  %v1142_v10 = vld [vmem:[#allocation6 + $0xc4] sm:$0xf]  ;;  %v893_v11 = vld [vmem:[#allocation6 + $0xc8] sm:$0xf0]  ;;  %v775_v14 = vld [vmem:[#allocation2] sm:$0xf]  ;;  %v832_v26 = vor.u32 %v1126_v7, %v829_v9 }
  0x2e   :  { %656 = vmatpush.bf16.msra.mxu3 %v988_v44  ;;  %v1207_v12 = vpop.eup %1206  ;;  %v1158_v15 = vld [vmem:[#allocation6 + $0x144] sm:$0xf]  ;;  %v957_v16 = vld [vmem:[#allocation6 + $0x148] sm:$0xf0]  ;;  %v1189_v23 = vld [vmem:[#allocation6 + $0x234] sm:$0xf0]  ;;  %v896_v32 = vor.u32 %v1142_v10, %v893_v11 }
  0x2f   :  { %663 = vmatpush.bf16.msrb.mxu0 %v1108_v39  ;;  %v1209_v17 = vpop.eup %1208  ;;  %v1115_v19 = vld [vmem:[#allocation2 + $0x10] sm:$0xf0]  ;;  %v55_v20 = vmul.f32 2.0, %v1207_v12  ;;  %v1317_v21 = vmul.f32 1.875, %v1207_v12  ;;  %v1124_v24 = vld [vmem:[#allocation6 + $0x34] sm:$0xf]  ;;  %v960_v38 = vor.u32 %v1158_v15, %v957_v16 }
  0x30   :  { %677 = vmatpush.bf16.msrb.mxu1 %v856_v40  ;;  %v821_v25 = vld [vmem:[#allocation6 + $0x38] sm:$0xf0]  ;;  %v1319_v27 = vor.u32 %v1115_v19, %v775_v14  ;;  %v56_v28 = vmul.f32 2.0, %v1209_v17  ;;  %v1321_v29 = vmul.f32 1.875, %v1209_v17  ;;  %v1140_v30 = vld [vmem:[#allocation6 + $0xb4] sm:$0xf] }
  0x31   :  { %691 = vmatpush.bf16.msrb.mxu2 %v920_v43  ;;  %v885_v31 = vld [vmem:[#allocation6 + $0xb8] sm:$0xf0]  ;;  %v65_v33 = vmul.f32 %v1317_v21, %v55_v20  ;;  %v73_v34 = vmul.f32 1.8666667, %v1207_v12  ;;  %v1156_v35 = vld [vmem:[#allocation6 + $0x134] sm:$0xf]  ;;  %v59_v37 = vpack.c.bf16 %v55_v20, %v55_v20  ;;  %v824_v49 = vor.u32 %v1124_v24, %v821_v25 }
  0x32   :  { %705 = vmatpush.bf16.msrb.mxu3 %v984_v48  ;;  %v949_v36 = vld [vmem:[#allocation6 + $0x138] sm:$0xf0]  ;;  %615 = vmatmul.bf16.vlgmr.msra.gmra.mxu0 %v1319_v27  ;;  %v66_v39 = vmul.f32 %v1321_v29, %v56_v28  ;;  %v74_v40 = vmul.f32 1.8666667, %v1209_v17  ;;  %v60_v41 = vpack.c.bf16 %v56_v28, %v56_v28  ;;  %v1067_v42 = vld [vmem:[#allocation6 + $0x220] sm:$0xf]  ;;  %v1076_v48 = vor.u32 %v1189_v23, %v1075_v22 }
  0x33   :  { %664 = vmatpush.bf16.msrb.mxu0 %v1100_v55  ;;  %v1187_v43 = vld [vmem:[#allocation6 + $0x224] sm:$0xf0]  ;;  %v771_v44 = vadd.f32 -1.125, %v65_v33  ;;  %v77_v45 = vmul.f32 1.6, %v55_v20  ;;  %v888_v52 = vor.u32 %v1140_v30, %v885_v31  ;;  %v952_v59 = vor.u32 %v1156_v35, %v949_v36  ;;  %s757_s23 = sshll.u32 %s1346_s2, 4  ;;  %s758_s23 = int_to_ptr.hbm [resolvable:$true] %s757_s23 }
  0x34   :  { %678 = vmatpush.bf16.msrb.mxu1 %v848_v56  ;;  %61 = vst [vmem:[#allocation2 + $0x4] sm:$0xf] %v59_v37  ;;  %v1122_v46 = vld [vmem:[#allocation6 + $0x24] sm:$0xf]  ;;  %v772_v47 = vadd.f32 -1.125, %v66_v39  ;;  %v1068_v0 = vor.u32 %v1187_v43, %v1067_v42  ;;  %s1294_s24 = smov 256  }
  0x35   :  { %692 = vmatpush.bf16.msrb.mxu2 %v912_v58  ;;  %v78_v50 = vmul.f32 1.6, %v56_v28  ;;  %62 = vst [vmem:[#allocation2 + $0x18] sm:$0xf] %v60_v41  ;;  %v69_v51 = vpack.c.bf16 %v771_v44, %v771_v44  ;;  %v75_v53 = vmul.f32 %v771_v44, %v73_v34  ;;  %v813_v54 = vld [vmem:[#allocation6 + $0x28] sm:$0xf0] }
  0x36   :  { %706 = vmatpush.bf16.msrb.mxu3 %v976_v62  ;;  %v1138_v55 = vld [vmem:[#allocation6 + $0xa4] sm:$0xf]  ;;  %v877_v56 = vld [vmem:[#allocation6 + $0xa8] sm:$0xf0]  ;;  %v70_v57 = vpack.c.bf16 %v772_v47, %v772_v47  ;;  %v76_v58 = vmul.f32 %v772_v47, %v74_v40  ;;  %v1059_v62 = vld [vmem:[#allocation6 + $0x210] sm:$0xf] }
  0x37   :  { %665 = vmatpush.bf16.msrb.mxu0 %v1092_v3  ;;  %v1154_v60 = vld [vmem:[#allocation6 + $0x124] sm:$0xf]  ;;  %v941_v61 = vld [vmem:[#allocation6 + $0x128] sm:$0xf0]  ;;  %71 = vst [vmem:[#allocation2 + $0x8] sm:$0xf] %v69_v51  ;;  %v79_v63 = vsub.f32 %v75_v53, %v77_v45  ;;  %v880_v9 = vor.u32 %v1138_v55, %v877_v56 }
  0x38   :  { %679 = vmatpush.bf16.msrb.mxu1 %v840_v4  ;;  %v1185_v1 = vld [vmem:[#allocation6 + $0x214] sm:$0xf0]  ;;  %v1120_v2 = vld [vmem:[#allocation6 + $0x14] sm:$0xf]  ;;  %72 = vst [vmem:[#allocation2 + $0x1c] sm:$0xf] %v70_v57  ;;  %v80_v3 = vsub.f32 %v76_v58, %v78_v50  ;;  %v816_v4 = vor.u32 %v1122_v46, %v813_v54  ;;  %v944_v16 = vor.u32 %v1154_v60, %v941_v61 }
  0x39   :  { %693 = vmatpush.bf16.msrb.mxu2 %v904_v8  ;;  %v87_v5 = vmul.f32 2.0833333, %v771_v44  ;;  %v88_v6 = vmul.f32 2.0833333, %v772_v47  ;;  %v81_v7 = vpack.c.bf16 %v79_v63, %v79_v63  ;;  %v85_v8 = vmul.f32 %v79_v63, %v1317_v21  ;;  %v805_v10 = vld [vmem:[#allocation6 + $0x18] sm:$0xf0] }
  0x3a   :  { %707 = vmatpush.bf16.msrb.mxu3 %v968_v13  ;;  %v1136_v11 = vld [vmem:[#allocation6 + $0x94] sm:$0xf]  ;;  %v869_v12 = vld [vmem:[#allocation6 + $0x98] sm:$0xf0]  ;;  %v82_v13 = vpack.c.bf16 %v80_v3, %v80_v3  ;;  %v86_v14 = vmul.f32 %v80_v3, %v1321_v29  ;;  %v1060_v20 = vor.u32 %v1185_v1, %v1059_v62  ;;  %v1051_v22 = vld [vmem:[#allocation6 + $0x200] sm:$0xf]  ;;  %v808_v25 = vor.u32 %v1120_v2, %v805_v10 }
  0x3b   :  { %666 = vmatpush.bf16.msrb.mxu0 %v1084_v18  ;;  %v1113_v15 = vld [vmem:[#allocation2 + $0x4] sm:$0xf]  ;;  %v1152_v17 = vld [vmem:[#allocation6 + $0x114] sm:$0xf]  ;;  %v933_v18 = vld [vmem:[#allocation6 + $0x118] sm:$0xf0]  ;;  %v89_v24 = vsub.f32 %v85_v8, %v87_v5  ;;  %v872_v30 = vor.u32 %v1136_v11, %v869_v12 }
  0x3c   :  { %680 = vmatpush.bf16.msrb.mxu1 %v832_v26  ;;  %83 = vst [vmem:[#allocation2 + $0xc] sm:$0xf] %v81_v7  ;;  %v777_v19 = vld [vmem:[#allocation2 + $0x14] sm:$0xf0]  ;;  %v1183_v23 = vld [vmem:[#allocation6 + $0x204] sm:$0xf0]  ;;  %v90_v29 = vsub.f32 %v86_v14, %v88_v6  ;;  %v936_v36 = vor.u32 %v1152_v17, %v933_v18 }
  0x3d   :  { %694 = vmatpush.bf16.msrb.mxu2 %v896_v32  ;;  %84 = vst [vmem:[#allocation2 + $0x20] sm:$0xf] %v82_v13  ;;  %v1328_v21 = vor.u32 %v1113_v15, %v777_v19  ;;  %v1118_v26 = vld [vmem:[#allocation6 + $0x4] sm:$0xf]  ;;  %v797_v28 = vld [vmem:[#allocation6 + $0x8] sm:$0xf0]  ;;  %v91_v34 = vpack.c.bf16 %v89_v24, %v89_v24  ;;  %v1052_v43 = vor.u32 %v1183_v23, %v1051_v22 }
  0x3e   :  { %708 = vmatpush.bf16.msrb.mxu3 %v960_v38  ;;  %v1134_v31 = vld [vmem:[#allocation6 + $0x84] sm:$0xf]  ;;  %v861_v32 = vld [vmem:[#allocation6 + $0x88] sm:$0xf0]  ;;  %v1180_v33 = vld [vmem:[#allocation6 + $0x1f4] sm:$0xf]  ;;  %v92_v39 = vpack.c.bf16 %v90_v29, %v90_v29  ;;  %v800_v44 = vor.u32 %v1118_v26, %v797_v28 }
  0x3f   :  { %667 = vmatpush.bf16.msrb.mxu0 %v1076_v48  ;;  %v783_v35 = vld [vmem:[#allocation2 + $0x8] sm:$0xf]  ;;  %629 = vmatmul.bf16.vlgmr.msra.gmra.mxu1 %v1328_v21  ;;  %v1045_v37 = vld [vmem:[#allocation6 + $0x1f8] sm:$0xf0]  ;;  %v1196_v38 = vld [vmem:[#allocation6 + $0x274] sm:$0xf]  ;;  %v864_v47 = vor.u32 %v1134_v31, %v861_v32 }
  0x40   :  { %681 = vmatpush.bf16.msrb.mxu1 %v824_v49  ;;  %v1116_v40 = vld [vmem:[#allocation2 + $0x18] sm:$0xf0]  ;;  %v1109_v41 = vld [vmem:[#allocation6 + $0x278] sm:$0xf0]  ;;  %93 = vst [vmem:[#allocation2 + $0x10] sm:$0xf] %v91_v34  ;;  %v1048_v48 = vor.u32 %v1180_v33, %v1045_v37 }
  0x41   :  { %695 = vmatpush.bf16.msrb.mxu2 %v888_v52  ;;  %v1331_v42 = vor.u32 %v1116_v40, %v783_v35  ;;  %94 = vst [vmem:[#allocation2 + $0x24] sm:$0xf] %v92_v39  ;;  %v1150_v45 = vld [vmem:[#allocation6 + $0x104] sm:$0xf]  ;;  %v925_v46 = vld [vmem:[#allocation6 + $0x108] sm:$0xf0]  ;;  %v1112_v50 = vor.u32 %v1196_v38, %v1109_v41 }
  0x42   :  { %709 = vmatpush.bf16.msrb.mxu3 %v952_v59  ;;  %v1178_v51 = vld [vmem:[#allocation6 + $0x1e4] sm:$0xf]  ;;  %v1037_v52 = vld [vmem:[#allocation6 + $0x1e8] sm:$0xf0]  ;;  %v928_v54 = vor.u32 %v1150_v45, %v925_v46  ;;  %v1176_v61 = vld [vmem:[#allocation6 + $0x1d4] sm:$0xf] }
  0x43   :  { %668 = vmatpush.bf16.msrb.mxu0 %v1068_v0  ;;  %643 = vmatmul.bf16.vlgmr.msra.gmra.mxu2 %v1331_v42  ;;  %v1114_v49 = vld [vmem:[#allocation2 + $0xc] sm:$0xf]  ;;  %v1194_v55 = vld [vmem:[#allocation6 + $0x264] sm:$0xf]  ;;  %v1101_v56 = vld [vmem:[#allocation6 + $0x268] sm:$0xf0]  ;;  %v1040_v58 = vor.u32 %v1178_v51, %v1037_v52 }
  0x44   :  { %682 = vmatpush.bf16.msrb.mxu1 %v816_v4  ;;  %v785_v53 = vld [vmem:[#allocation2 + $0x1c] sm:$0xf0]  ;;  %v1104_v60 = vor.u32 %v1194_v55, %v1101_v56  ;;  %v1029_v62 = vld [vmem:[#allocation6 + $0x1d8] sm:$0xf0]  ;;  %v1192_v0 = vld [vmem:[#allocation6 + $0x254] sm:$0xf] }
  0x45   :  { %696 = vmatpush.bf16.msrb.mxu2 %v880_v9  ;;  %v1334_v57 = vor.u32 %v1114_v49, %v785_v53  ;;  %v1093_v1 = vld [vmem:[#allocation6 + $0x258] sm:$0xf0]  ;;  %v1032_v3 = vor.u32 %v1176_v61, %v1029_v62  ;;  %v1174_v5 = vld [vmem:[#allocation6 + $0x1c4] sm:$0xf]  ;;  %v1021_v6 = vld [vmem:[#allocation6 + $0x1c8] sm:$0xf0] }
  0x46   :  { %710 = vmatpush.bf16.msrb.mxu3 %v944_v16  ;;  %v1096_v4 = vor.u32 %v1192_v0, %v1093_v1  ;;  %v1190_v7 = vld [vmem:[#allocation6 + $0x244] sm:$0xf]  ;;  %v1085_v8 = vld [vmem:[#allocation6 + $0x248] sm:$0xf0]  ;;  %v1024_v9 = vor.u32 %v1174_v5, %v1021_v6  ;;  %v1172_v11 = vld [vmem:[#allocation6 + $0x1b4] sm:$0xf] }
  0x47   :  { %669 = vmatpush.bf16.msrb.mxu0 %v1060_v20  ;;  %657 = vmatmul.bf16.vlgmr.msra.gmra.mxu3 %v1334_v57  ;;  %v791_v59 = vld [vmem:[#allocation2 + $0x10] sm:$0xf]  ;;  %v1088_v10 = vor.u32 %v1190_v7, %v1085_v8  ;;  %v1013_v12 = vld [vmem:[#allocation6 + $0x1b8] sm:$0xf0]  ;;  %v1188_v13 = vld [vmem:[#allocation6 + $0x234] sm:$0xf] }
  0x48   :  { %683 = vmatpush.bf16.msrb.mxu1 %v808_v25  ;;  %v1117_v63 = vld [vmem:[#allocation2 + $0x20] sm:$0xf0]  ;;  %v1077_v14 = vld [vmem:[#allocation6 + $0x238] sm:$0xf0]  ;;  %v1016_v15 = vor.u32 %v1172_v11, %v1013_v12  ;;  %v1170_v17 = vld [vmem:[#allocation6 + $0x1a4] sm:$0xf] }
  0x49   :  { %697 = vmatpush.bf16.msrb.mxu2 %v872_v30  ;;  %v792_v2 = vor.u32 %v1117_v63, %v791_v59  ;;  %v1080_v16 = vor.u32 %v1188_v13, %v1077_v14  ;;  %v1005_v18 = vld [vmem:[#allocation6 + $0x1a8] sm:$0xf0]  ;;  %v1186_v19 = vld [vmem:[#allocation6 + $0x224] sm:$0xf]  ;;  %v1168_v24 = vld [vmem:[#allocation6 + $0x194] sm:$0xf] }
  0x4a   :  { %711 = vmatpush.bf16.msrb.mxu3 %v936_v36  ;;  %v1069_v20 = vld [vmem:[#allocation6 + $0x228] sm:$0xf0]  ;;  %v1008_v22 = vor.u32 %v1170_v17, %v1005_v18  ;;  %v1184_v25 = vld [vmem:[#allocation6 + $0x214] sm:$0xf]  ;;  %v1061_v26 = vld [vmem:[#allocation6 + $0x218] sm:$0xf0] }
  0x4b   :  { %670 = vmatpush.bf16.msrb.mxu0 %v1052_v43  ;;  %v1072_v23 = vor.u32 %v1186_v19, %v1069_v20  ;;  %v1166_v29 = vld [vmem:[#allocation6 + $0x184] sm:$0xf]  ;;  %v989_v30 = vld [vmem:[#allocation6 + $0x188] sm:$0xf0]  ;;  %s1295_s25 = smov 16  }
  0x4c   :  { %684 = vmatpush.bf16.msrb.mxu1 %v800_v44  ;;  %v1182_v31 = vld [vmem:[#allocation6 + $0x204] sm:$0xf]  ;;  %v1053_v32 = vld [vmem:[#allocation6 + $0x208] sm:$0xf0]  ;;  %v992_v33 = vor.u32 %v1166_v29, %v989_v30 }
  0x4d   :  { %698 = vmatpush.bf16.msrb.mxu2 %v864_v47  ;;  %v1056_v34 = vor.u32 %v1182_v31, %v1053_v32 }
  0x4e   :  { %712 = vmatpush.bf16.msrb.mxu3 %v928_v54  ;;  %671 = vmatmul.bf16.vlgmr.msrb.gmra.mxu0 %v792_v2 }
  0x4f   :  { %719 = vmatpush.bf16.msra.mxu0 %v1048_v48  ;;  %685 = vmatmul.bf16.vlgmr.msrb.gmra.mxu1 %v1319_v27  ;;  %v997_v27 = vld [vmem:[#allocation6 + $0x198] sm:$0xf0] }
  0x50   :  { %733 = vmatpush.bf16.msra.mxu1 %v1112_v50  ;;  %v1000_v28 = vor.u32 %v1168_v24, %v997_v27 }
  0x53   :  { %720 = vmatpush.bf16.msra.mxu0 %v1040_v58  ;;  %699 = vmatmul.bf16.vlgmr.msrb.gmra.mxu2 %v1328_v21  ;;  %v1064_v21 = vor.u32 %v1184_v25, %v1061_v26 }
  0x54   :  { %734 = vmatpush.bf16.msra.mxu1 %v1104_v60 }
  0x57   :  { %721 = vmatpush.bf16.msra.mxu0 %v1032_v3  ;;  %713 = vmatmul.bf16.vlgmr.msrb.gmra.mxu3 %v1331_v42 }
  0x58   :  { %735 = vmatpush.bf16.msra.mxu1 %v1096_v4 }
  0x5b   :  { %722 = vmatpush.bf16.msra.mxu0 %v1024_v9 }
  0x5c   :  { %736 = vmatpush.bf16.msra.mxu1 %v1088_v10 }
  0x5f   :  { %723 = vmatpush.bf16.msra.mxu0 %v1016_v15 }
  0x60   :  { %737 = vmatpush.bf16.msra.mxu1 %v1080_v16 }
  0x63   :  { %724 = vmatpush.bf16.msra.mxu0 %v1008_v22 }
  0x64   :  { %738 = vmatpush.bf16.msra.mxu1 %v1072_v23 }
  0x67   :  { %725 = vmatpush.bf16.msra.mxu0 %v1000_v28 }
  0x68   :  { %739 = vmatpush.bf16.msra.mxu1 %v1064_v21 }
  0x6b   :  { %726 = vmatpush.bf16.msra.mxu0 %v992_v33 }
  0x6c   :  { %740 = vmatpush.bf16.msra.mxu1 %v1056_v34 }
  0x6e   :  { %727 = vmatmul.bf16.vlgmr.msra.gmra.mxu0 %v1334_v57 }
  0x6f   :  { %741 = vmatmul.bf16.vlgmr.msra.gmra.mxu1 %v792_v2 }
  0xaf   :  { %v616_v35 = vpop.f32.mrf.mxu0 }
  0xb7   :  { %v618_v37 = vpop.f32.mrf.mxu0 }
  0xbc   :  { %v630_v36 = vpop.f32.mrf.mxu1 }
  0xbd   :  { %v631_v38 = vadd.f32 %v630_v36, %v616_v35 }
  0xc4   :  { %v632_v41 = vpop.f32.mrf.mxu1 }
  0xc5   :  { %v633_v45 = vadd.f32 %v632_v41, %v618_v37 }
  0xc6   :  { %v644_v39 = vpop.f32.mrf.mxu2 }
  0xc7   :  { %v645_v40 = vadd.f32 %v644_v39, %v631_v38 }
  0xca   :  { %v658_v43 = vpop.f32.mrf.mxu3 }
  0xcb   :  { %v672_v42 = vpop.f32.mrf.mxu0  ;;  %v659_v44 = vadd.f32 %v658_v43, %v645_v40 }
  0xcc   :  { %v686_v49 = vpop.f32.mrf.mxu1 }
  0xcd   :  { %v673_v46 = vadd.f32 %v672_v42, %v659_v44 }
  0xce   :  { %v646_v47 = vpop.f32.mrf.mxu2 }
  0xcf   :  { %v647_v48 = vadd.f32 %v646_v47, %v633_v45  ;;  %747 = vst [vmem:[#allocation8] sm:$0xff] %v673_v46 }
  0xd2   :  { %v660_v50 = vpop.f32.mrf.mxu3 }
  0xd3   :  { %v674_v51 = vpop.f32.mrf.mxu0  ;;  %v661_v52 = vadd.f32 %v660_v50, %v647_v48 }
  0xd4   :  { %v688_v55 = vpop.f32.mrf.mxu1 }
  0xd5   :  { %v675_v53 = vadd.f32 %v674_v51, %v661_v52 }
  0xd6   :  { %v700_v54 = vpop.f32.mrf.mxu2 }
  0xd7   :  { %749 = vst [vmem:[#allocation8 + $0x10] sm:$0xff] %v675_v53  ;;  %v701_v57 = vadd.f32 %v700_v54, %v686_v49 }
  0xda   :  { %v714_v56 = vpop.f32.mrf.mxu3 }
  0xdb   :  { %v715_v58 = vadd.f32 %v714_v56, %v701_v57 }
  0xde   :  { %v702_v59 = vpop.f32.mrf.mxu2 }
  0xdf   :  { %v703_v63 = vadd.f32 %v702_v59, %v688_v55 }
  0xe2   :  { %v716_v1 = vpop.f32.mrf.mxu3 }
  0xe3   :  { %v717_v2 = vadd.f32 %v716_v1, %v703_v63 }
  0xeb   :  { %v728_v60 = vpop.f32.mrf.mxu0 }
  0xec   :  { %v729_v61 = vadd.f32 %v728_v60, %v715_v58  ;;  %v742_v62 = vpop.f32.mrf.mxu1 }
  0xee   :  { %v743_v0 = vadd.f32 %v742_v62, %v729_v61 }
  0xf0   :  { %748 = vst [vmem:[#allocation8 + $0x8] sm:$0xff] %v743_v0 }
  0xf3   :  { %v730_v3 = vpop.f32.mrf.mxu0 }
  0xf4   :  { %v731_v4 = vadd.f32 %v730_v3, %v717_v2  ;;  %v744_v5 = vpop.f32.mrf.mxu1 }
  0xf6   :  { %v745_v6 = vadd.f32 %v744_v5, %v731_v4 }
  0xf8   :  { %750 = vst [vmem:[#allocation8 + $0x18] sm:$0xff] %v745_v6 }
  0xf9   :  { %763 = dma.vmem_to_hbm [thread:$0]  %s756_s1, 512, %s758_s23, [#allocation5], %s1294_s24, %s1294_s24, %s1295_s25  }
  0xfa   :  { %1286 = dma.done.wait [#allocation5], 512  }
  0xfb   :  { %1287 = vsyncadd [#allocation5], 4294966784 }
  0xfc   :  { %768 = vsyncpa [#allocation4], 1 }
  0xfd   :  { %769 = vsyncpa [#allocation7], 1 }
  0xfe   :  { %770 = vsyncpa [#allocation5], 1 }

</bundles_post_ra>
